<compile_context>
chip_gen: v5e
topology: v5e:2x2
jax: 0.10.0
libtpu: 0.0.40
codegen_flags: <defaults>
</compile_context>

<pallas_src>
import functools
import math

import jax
import jax.numpy as jnp
from jax.experimental import pallas as pl
from jax.experimental.pallas import tpu as pltpu

_LANE = 128


def _round_up(n, m):
    return ((n + m - 1) // m) * m


# ------------------------------------------------------------------ kernels --

def _cls_head_kernel(x_ref, w1_ref, b1_ref, w2_ref, b2_ref, out_ref):
    """x_ref: (Tb, D) CLS rows only.  dense -> relu -> out_proj on the MXU."""
    h = x_ref[...].astype(jnp.float32)                                  # (Tb, D)
    h = jnp.dot(h.astype(jnp.bfloat16), w1_ref[...],
                preferred_element_type=jnp.float32) + b1_ref[...]
    h = jnp.maximum(h, 0.0)                                             # relu (f32 VPU)
    logits = jnp.dot(h.astype(jnp.bfloat16), w2_ref[...],
                     preferred_element_type=jnp.float32) + b2_ref[...]
    out_ref[...] = logits.astype(out_ref.dtype)


def _reduce_head_kernel(x_ref, w1_ref, b1_ref, w2_ref, b2_ref, out_ref, acc_ref,
                        *, reduce_method, seq_len):
    """Streams the sequence reduction over grid axis 1; head on the last step."""
    k = pl.program_id(1)

    @pl.when(k == 0)
    def _init():
        if reduce_method == 'maximum':
            acc_ref[...] = jnp.full(acc_ref.shape, -jnp.inf, acc_ref.dtype)
        else:
            acc_ref[...] = jnp.zeros(acc_ref.shape, acc_ref.dtype)

    x = x_ref[...].astype(jnp.float32)                                  # (Tb, Ts, D)
    if reduce_method == 'maximum':
        acc_ref[...] = jnp.maximum(acc_ref[...], jnp.max(x, axis=1))
    else:  # 'sum' / 'mean' accumulate in f32
        acc_ref[...] = acc_ref[...] + jnp.sum(x, axis=1)

    @pl.when(k == pl.num_programs(1) - 1)
    def _finalize():
        h = acc_ref[...]
        if reduce_method == 'mean':
            h = h * (1.0 / float(seq_len))
        h = jnp.dot(h.astype(jnp.bfloat16), w1_ref[...],
                    preferred_element_type=jnp.float32) + b1_ref[...]
        h = jnp.maximum(h, 0.0)
        logits = jnp.dot(h.astype(jnp.bfloat16), w2_ref[...],
                         preferred_element_type=jnp.float32) + b2_ref[...]
        out_ref[...] = logits.astype(out_ref.dtype)


# ------------------------------------------------------------------ wrapper --

def _pick_seq_tile(S, Tb, D, itemsize, budget_bytes=8 << 20):
    """Largest divisor of S whose double-buffered x tile fits the VMEM budget."""
    cands = sorted({t for t in (S, 2048, 1024, 512, 256, 128, 64, 32, 16, 8, 4, 2, 1)
                    if t <= S and S % t == 0}, reverse=True)
    for t in cands:
        if 2 * Tb * t * D * itemsize <= budget_bytes:
            return t
    return cands[-1]


def germline_classifier_forward(x, params, *, reduce_method='cls', num_labels=None):
    """x: (B, S, D).  params: w1 (D,I), b1 (1,I), w2 (I,L), b2 (1,L) in float32."""
    assert reduce_method in ('mean', 'sum', 'maximum', 'cls')
    B, S, D = x.shape
    w1, b1, w2, b2 = params['w1'], params['b1'], params['w2'], params['b2']
    I = w1.shape[1]
    L = w2.shape[1]
    if num_labels is None:
        num_labels = L

    # Lane-dense output: pad label dim to a multiple of 128 with zero columns.
    L_pad = _round_up(max(L, _LANE), _LANE)
    w2p = jnp.zeros((I, L_pad), w2.dtype).at[:, :L].set(w2)
    b2p = jnp.zeros((1, L_pad), b2.dtype).at[:, :L].set(b2)

    # bf16 weights for the MXU (halves weight DMA); biases stay f32.
    w1b = w1.astype(jnp.bfloat16)
    w2b = w2p.astype(jnp.bfloat16)
    b1f = b1.astype(jnp.float32)
    b2f = b2p.astype(jnp.float32)

    # Batch tile: >=128 fills the MXU M dim; tiny B just uses B.
    Tb = 128 if B >= 128 else B
    B_pad = _round_up(B, Tb)

    weight_bytes = (w1b.size * 2 + w2b.size * 2 + b1f.size * 4 + b2f.size * 4)
    out_tile_bytes = Tb * L_pad * 4
    itemsize = x.dtype.itemsize

    if reduce_method == 'cls':
        # Only the CLS row is ever moved into the kernel: O(B*D), not O(B*S*D).
        x_red = x[:, 0, :]
        if B_pad != B:
            x_red = jnp.pad(x_red, ((0, B_pad - B), (0, 0)))
        grid = (B_pad // Tb,)
        kernel = _cls_head_kernel
        in_specs = [
            pl.BlockSpec((Tb, D), lambda i: (i, 0)),
            pl.BlockSpec((D, I), lambda i: (0, 0)),       # VMEM-resident weights
            pl.BlockSpec((1, I), lambda i: (0, 0)),
            pl.BlockSpec((I, L_pad), lambda i: (0, 0)),
            pl.BlockSpec((1, L_pad), lambda i: (0, 0)),
        ]
        out_spec = pl.BlockSpec((Tb, L_pad), lambda i: (i, 0))
        scratch_shapes = []
        dim_sem = ("parallel",)
        x_tile_bytes = 2 * Tb * D * itemsize
        scratch_bytes = 0
        flops = 2 * B_pad * (D * I + I * L_pad)
        bytes_accessed = int(x_red.size * itemsize + weight_bytes + B_pad * L_pad * 4)
        x_arg = x_red
    else:
        Ts = _pick_seq_tile(S, Tb, D, itemsize)
        x_red = x
        if B_pad != B:
            x_red = jnp.pad(x_red, ((0, B_pad - B), (0, 0), (0, 0)))
        grid = (B_pad // Tb, S // Ts)                      # reduction axis last
        kernel = functools.partial(_reduce_head_kernel,
                                   reduce_method=reduce_method, seq_len=S)
        in_specs = [
            pl.BlockSpec((Tb, Ts, D), lambda i, k: (i, k, 0)),
            pl.BlockSpec((D, I), lambda i, k: (0, 0)),
            pl.BlockSpec((1, I), lambda i, k: (0, 0)),
            pl.BlockSpec((I, L_pad), lambda i, k: (0, 0)),
            pl.BlockSpec((1, L_pad), lambda i, k: (0, 0)),
        ]
        out_spec = pl.BlockSpec((Tb, L_pad), lambda i, k: (i, 0))
        scratch_shapes = [pltpu.VMEM((Tb, D), jnp.float32)]
        dim_sem = ("parallel", "arbitrary")
        x_tile_bytes = 2 * Tb * Ts * D * itemsize
        scratch_bytes = Tb * D * 4
        flops = B_pad * S * D + 2 * B_pad * (D * I + I * L_pad)
        bytes_accessed = int(x_red.size * itemsize + weight_bytes + B_pad * L_pad * 4)
        x_arg = x_red

    vmem_limit = int(min(max(x_tile_bytes + 2 * weight_bytes + 2 * out_tile_bytes
                             + scratch_bytes + (4 << 20), 16 << 20), 64 << 20))

    logits_pad = pl.pallas_call(
        kernel,
        out_shape=jax.ShapeDtypeStruct((B_pad, L_pad), jnp.float32),
        grid=grid,
        in_specs=in_specs,
        out_specs=out_spec,
        scratch_shapes=scratch_shapes,
        compiler_params=pltpu.CompilerParams(
            dimension_semantics=dim_sem,
            vmem_limit_bytes=vmem_limit),
        cost_estimate=pl.CostEstimate(flops=int(flops), transcendentals=0,
                                      bytes_accessed=bytes_accessed),
    )(x_arg, w1b, b1f, w2b, b2f)

    logits = logits_pad[:B, :L]
    return logits if num_labels > 1 else jnp.squeeze(logits, axis=-1)


# ------------------------------------------------------------- init & check --

def init_params(d_model, num_labels, key):
    # HuggingfaceClassifier (ParaGen): inner_dim defaults to 2 * d_model.
    inner_dim = 2 * d_model
    k1, k2, k3, k4 = jax.random.split(key, 4)
    s1 = 1.0 / math.sqrt(d_model)
    s2 = 1.0 / math.sqrt(inner_dim)
    return {
        'w1': jax.random.uniform(k1, (d_model, inner_dim), jnp.float32, -s1, s1),
        'b1': jax.random.uniform(k2, (1, inner_dim), jnp.float32, -s1, s1),
        'w2': jax.random.uniform(k3, (inner_dim, num_labels), jnp.float32, -s2, s2),
        'b2': jax.random.uniform(k4, (1, num_labels), jnp.float32, -s2, s2),
    }


def _reference(x, params, reduce_method, num_labels, mimic_bf16):
    xf = x.astype(jnp.float32)
    if reduce_method == 'mean':
        h = xf.mean(axis=1)
    elif reduce_method == 'sum':
        h = xf.sum(axis=1)
    elif reduce_method == 'maximum':
        h = xf.max(axis=1)
    else:  # 'cls'
        h = xf[:, 0, :]
    w1, b1, w2, b2 = params['w1'], params['b1'], params['w2'], params['b2']
    if mimic_bf16:
        h1 = jnp.dot(h.astype(jnp.bfloat16), w1.astype(jnp.bfloat16),
                     preferred_element_type=jnp.float32) + b1
        h1 = jnp.maximum(h1, 0.0)
        logits = jnp.dot(h1.astype(jnp.bfloat16), w2.astype(jnp.bfloat16),
                         preferred_element_type=jnp.float32) + b2
    else:
        h1 = jnp.maximum(h @ w1 + b1, 0.0)
        logits = h1 @ w2 + b2
    return logits if num_labels > 1 else jnp.squeeze(logits, axis=-1)


if __name__ == "__main__":
    key = jax.random.PRNGKey(0)
    kx, kp = jax.random.split(key)

    B, S, D = 2, 8, 32          # batch, sequence, d_model
    num_labels = 5

    x = jax.random.normal(kx, (B, S, D), dtype=jnp.float32)
    params = init_params(D, num_labels, kp)

    for method in ('cls', 'mean', 'sum', 'maximum'):
        out = germline_classifier_forward(x, params,
                                          reduce_method=method,
                                          num_labels=num_labels)
        out = jax.block_until_ready(out)
        ref_bf16 = _reference(x, params, method, num_labels, mimic_bf16=True)
        ref_f32 = _reference(x, params, method, num_labels, mimic_bf16=False)
        assert out.shape == (B, num_labels), f"bad shape for {method}: {out.shape}"
        assert jnp.allclose(out, ref_bf16, atol=1e-4, rtol=1e-4), \
            f"mismatch vs bf16-matmul reference ({method})"
        assert jnp.allclose(out, ref_f32, atol=3e-2, rtol=3e-2), \
            f"drift vs f32 reference ({method})"

    print("KERNEL_OK")
</pallas_src>

<mosaic_0001>
module attributes {stable_mosaic.version = 11 : i64} {
  func.func @_cls_head_kernel(%arg0: i32, %arg1: memref<2x32xf32, #tpu.memory_space<vmem>>, %arg2: memref<32x64xbf16, #tpu.memory_space<vmem>>, %arg3: memref<1x64xf32, #tpu.memory_space<vmem>>, %arg4: memref<64x128xbf16, #tpu.memory_space<vmem>>, %arg5: memref<1x128xf32, #tpu.memory_space<vmem>>, %arg6: memref<2x128xf32, #tpu.memory_space<vmem>>) attributes {dimension_semantics = [#tpu.dimension_semantics<parallel>], iteration_bounds = array<i64: 1>, scalar_prefetch = 0 : i64, scratch_operands = 0 : i64, tpu.core_type = #tpu.core_type<tc>, window_params = [{transform_indices = @transform_0, window_bounds = array<i64: 2, 32>}, {pipeline_mode = #tpu.pipeline_mode<synchronous>, transform_indices = @transform_1, window_bounds = array<i64: 32, 64>}, {pipeline_mode = #tpu.pipeline_mode<synchronous>, transform_indices = @transform_2, window_bounds = array<i64: 1, 64>}, {pipeline_mode = #tpu.pipeline_mode<synchronous>, transform_indices = @transform_3, window_bounds = array<i64: 64, 128>}, {pipeline_mode = #tpu.pipeline_mode<synchronous>, transform_indices = @transform_4, window_bounds = array<i64: 1, 128>}, {transform_indices = @transform_5, window_bounds = array<i64: 2, 128>}]} {
    %c0 = arith.constant 0 : index
    %c0_0 = arith.constant 0 : index
    %0 = vector.load %arg1[%c0, %c0_0] : memref<2x32xf32, #tpu.memory_space<vmem>>, vector<2x32xf32>
    %1 = arith.truncf %0 : vector<2x32xf32> to vector<2x32xbf16>
    %c0_1 = arith.constant 0 : index
    %c0_2 = arith.constant 0 : index
    %2 = vector.load %arg2[%c0_1, %c0_2] : memref<32x64xbf16, #tpu.memory_space<vmem>>, vector<32x64xbf16>
    %cst = arith.constant dense<0.000000e+00> : vector<2x64xf32>
    %3 = tpu.matmul %1, %2, %cst {dimension_numbers = #tpu.dot_dimension_numbers<[1], [0], [0], [1], [0, 0, 1, 1], [], []>} : vector<2x32xbf16>, vector<32x64xbf16>, vector<2x64xf32> -> vector<2x64xf32>
    %c0_3 = arith.constant 0 : index
    %c0_4 = arith.constant 0 : index
    %4 = vector.load %arg3[%c0_3, %c0_4] : memref<1x64xf32, #tpu.memory_space<vmem>>, vector<1x64xf32>
    %5 = vector.broadcast %4 : vector<1x64xf32> to vector<2x64xf32>
    %6 = arith.addf %3, %5 : vector<2x64xf32>
    %cst_5 = arith.constant 0.000000e+00 : f32
    %7 = vector.broadcast %cst_5 : f32 to vector<2x64xf32>
    %8 = arith.maximumf %6, %7 : vector<2x64xf32>
    %9 = arith.truncf %8 : vector<2x64xf32> to vector<2x64xbf16>
    %c0_6 = arith.constant 0 : index
    %c0_7 = arith.constant 0 : index
    %10 = vector.load %arg4[%c0_6, %c0_7] : memref<64x128xbf16, #tpu.memory_space<vmem>>, vector<64x128xbf16>
    %cst_8 = arith.constant dense<0.000000e+00> : vector<2x128xf32>
    %11 = tpu.matmul %9, %10, %cst_8 {dimension_numbers = #tpu.dot_dimension_numbers<[1], [0], [0], [1], [0, 0, 1, 1], [], []>} : vector<2x64xbf16>, vector<64x128xbf16>, vector<2x128xf32> -> vector<2x128xf32>
    %c0_9 = arith.constant 0 : index
    %c0_10 = arith.constant 0 : index
    %12 = vector.load %arg5[%c0_9, %c0_10] : memref<1x128xf32, #tpu.memory_space<vmem>>, vector<1x128xf32>
    %13 = vector.broadcast %12 : vector<1x128xf32> to vector<2x128xf32>
    %14 = arith.addf %11, %13 : vector<2x128xf32>
    %c0_11 = arith.constant 0 : index
    %c0_12 = arith.constant 0 : index
    %15 = vector.load %arg6[%c0_11, %c0_12] : memref<2x128xf32, #tpu.memory_space<vmem>>, vector<2x128xf32>
    tpu.vector_store %arg6[%c0_11, %c0_12], %14 {strides = array<i32>} : memref<2x128xf32, #tpu.memory_space<vmem>>, vector<2x128xf32>,
    return
  }
  func.func @transform_0(%arg0: i32) -> (i32, i32) {
    %c0_i32 = arith.constant 0 : i32
    %c0_i32_0 = arith.constant 0 : i32
    return %arg0, %c0_i32 : i32, i32
  }
  func.func @transform_1(%arg0: i32) -> (i32, i32) {
    %c0_i32 = arith.constant 0 : i32
    %c0_i32_0 = arith.constant 0 : i32
    %c0_i32_1 = arith.constant 0 : i32
    return %c0_i32, %c0_i32_0 : i32, i32
  }
  func.func @transform_2(%arg0: i32) -> (i32, i32) {
    %c0_i32 = arith.constant 0 : i32
    %c0_i32_0 = arith.constant 0 : i32
    %c0_i32_1 = arith.constant 0 : i32
    return %c0_i32, %c0_i32_0 : i32, i32
  }
  func.func @transform_3(%arg0: i32) -> (i32, i32) {
    %c0_i32 = arith.constant 0 : i32
    %c0_i32_0 = arith.constant 0 : i32
    %c0_i32_1 = arith.constant 0 : i32
    return %c0_i32, %c0_i32_0 : i32, i32
  }
  func.func @transform_4(%arg0: i32) -> (i32, i32) {
    %c0_i32 = arith.constant 0 : i32
    %c0_i32_0 = arith.constant 0 : i32
    %c0_i32_1 = arith.constant 0 : i32
    return %c0_i32, %c0_i32_0 : i32, i32
  }
  func.func @transform_5(%arg0: i32) -> (i32, i32) {
    %c0_i32 = arith.constant 0 : i32
    %c0_i32_0 = arith.constant 0 : i32
    return %arg0, %c0_i32 : i32, i32
  }
}

</mosaic_0001>

<bundles_post_ra>
// kernel: tpu_custom_call.1
= control target key start
LH: loop header
LB: loop body
LE: loop exit
PB: predicated region body
PF: predicated region fallthrough
CT: control target
= control target key end

     0   :  { %10 = vsyncpa [#allocation3], 0  ;;  %s376_s0 = inlined_call_operand.hbm [shape: f32[2,32], index: 0, kind: input, shape index: {}]   ;;  %s377_s1 = inlined_call_operand.hbm [shape: bf16[32,64], index: 1, kind: input, shape index: {}]   ;;  %s378_s2 = inlined_call_operand.vmem [shape: f32[1,64], index: 2, kind: input, shape index: {}]   ;;  %s379_s3 = inlined_call_operand.hbm [shape: bf16[64,128], index: 3, kind: input, shape index: {}]   ;;  %s380_s4 = inlined_call_operand.vmem [shape: f32[1,128], index: 4, kind: input, shape index: {}]   ;;  %s381_s5 = inlined_call_operand.hbm [shape: f32[2,128], index: 5, kind: output, shape index: {}]  }
   0x1   :  { %11 = vsyncpa [#allocation6], 0  ;;  %s28_s20 = sshll.u32 %s377_s1, 4  ;;  %s29_s20 = int_to_ptr.hbm [resolvable:$true] %s28_s20 }
   0x2   :  { %12 = vsyncpa [#allocation4], 0  ;;  %s322_s21 = smov [#allocation5]   ;;  %s18_s25 = sshll.u32 %s376_s0, 4  ;;  %s19_s25 = int_to_ptr.hbm [resolvable:$true] %s18_s25 }
   0x3   :  { %s30_s22 = sshll.u32 %s322_s21, 4  ;;  %s323_s26 = smov 64   ;;  %s31_s22 = int_to_ptr.vmem [resolvable:$true] %s30_s22 }
   0x4   :  { %s324_s27 = smov 4   ;;  %s325_s28 = smov [#allocation2]  }
   0x5   :  { %36 = dma.hbm_to_vmem [thread:$0]  %s29_s20, 256, %s31_s22, [#allocation6], %s323_s26, %s323_s26, %s324_s27  }
   0x6   :  { %s20_s29 = sshll.u32 %s325_s28, 4  ;;  %s43_s7 = sshll.u32 %s379_s3, 4  ;;  %s21_s29 = int_to_ptr.vmem [resolvable:$true] %s20_s29  ;;  %s44_s7 = int_to_ptr.hbm [resolvable:$true] %s43_s7 }
   0x7   :  { %23 = dma.hbm_to_vmem [thread:$0]  %s19_s25, 32, %s21_s29, [#allocation3]  }
   0x8   :  { %s326_s1 = smov [#allocation7]  }
   0x9   :  { %s45_s8 = sshll.u32 %s326_s1, 4  ;;  %s46_s8 = int_to_ptr.vmem [resolvable:$true] %s45_s8 }
   0xa   :  { %51 = dma.hbm_to_vmem [thread:$0]  %s44_s7, 512, %s46_s8, [#allocation6], %s323_s26, %s323_s26, %s324_s27  }
   0xb   :  { %316 = dma.done.wait [#allocation3], 32  }
   0xc   :  { %317 = vsyncadd [#allocation3], 4294967264 }
   0xd   :  { %318 = dma.done.wait [#allocation6], 768  }
   0xe   :  { %319 = vsyncadd [#allocation6], 4294966528  ;;  %v207_v0 = vld [vmem:[#allocation5 + $0x8] sm:$0xff]  ;;  %v206_v2 = vld [vmem:[#allocation5] sm:$0xff]  ;;  %vm89_vm0 = vcmask 261120   ;;  %vm144_vm1 = vcmask 523264  }
   0xf   :  { %v211_v1 = vld [vmem:[#allocation7 + $0x18] sm:$0xff]  ;;  %99 = vmatpush.bf16.msra.mxu0 %v207_v0  ;;  %v67_v3 = vld [vmem:[#allocation2] sm:$0x3]  ;;  %v210_v4 = vld [vmem:[#allocation7 + $0x10] sm:$0xff]  ;;  %s327_s11 = smov [#allocation8]   ;;  %s169_s15 = sshll.u32 %s381_s5, 4  ;;  %s170_s15 = int_to_ptr.hbm [resolvable:$true] %s169_s15 }
  0x10   :  { %152 = vmatpush.bf16.msra.mxu1 %v211_v1  ;;  %v68_v5 = vpack.c.bf16 %v67_v3, %v67_v3  ;;  %v209_v6 = vld [vmem:[#allocation7 + $0x8] sm:$0xff]  ;;  %v208_v7 = vld [vmem:[#allocation7] sm:$0xff]  ;;  %s167_s12 = sshll.u32 %s327_s11, 4  ;;  %s168_s12 = int_to_ptr.vmem [resolvable:$true] %s167_s12 }
  0x11   :  { %v218_v8 = vld [vmem:[%s378_s2] ss:$0 sm:$0xff] }
  0x12   :  { %v219_v14 = vld [vmem:[%s380_s4] ss:$0 sm:$0xff] }
  0x13   :  { %100 = vmatpush.bf16.msra.mxu0 %v206_v2 }
  0x14   :  { %153 = vmatpush.bf16.msra.mxu1 %v210_v4 }
  0x16   :  { %188 = vmatmul.msk.bf16.vlgmr.msra.gmra.mxu0 %vm89_vm0, %v68_v5 }
  0x18   :  { %154 = vmatpush.bf16.msra.mxu1 %v209_v6 }
  0x1c   :  { %155 = vmatpush.bf16.msra.mxu1 %v208_v7 }
  0x93   :  { %v102_v9 = vpop.f32.mrf.mxu0 }
  0x94   :  { %v103_v10 = vadd.f32 %v218_v8, %v102_v9 }
  0x96   :  { %v106_v11 = vmax.f32 %v103_v10, 0.0 }
  0x98   :  { %v107_v12 = vpack.c.bf16 %v106_v11, %v106_v11 }
  0x9a   :  { %205 = vmatmul.msk.bf16.vlgmr.msra.gmra.mxu1 %vm144_vm1, %v107_v12 }
  0x9b   :  { %v104_v13 = vpop.f32.mrf.mxu0 }
 0x117   :  { %v157_v15 = vpop.f32.mrf.mxu1 }
 0x118   :  { %v158_v16 = vadd.f32 %v219_v14, %v157_v15 }
 0x11a   :  { %161 = vst [vmem:[#allocation8] sm:$0x3] %v158_v16 }
 0x11b   :  { %172 = dma.vmem_to_hbm [thread:$0]  %s168_s12, 32, %s170_s15, [#allocation4]  }
 0x11f   :  { %v159_v17 = vpop.f32.mrf.mxu1 }
 0x120   :  { %320 = dma.done.wait [#allocation4], 32  }
 0x121   :  { %321 = vsyncadd [#allocation4], 4294967264 }
 0x122   :  { %177 = vsyncpa [#allocation3], 1 }
 0x123   :  { %178 = vsyncpa [#allocation6], 1 }
 0x124   :  { %179 = vsyncpa [#allocation4], 1 }

</bundles_post_ra>
